<compile_context>
chip_gen: v6e
topology: v6e:2x2x1
jax: 0.10.0
libtpu: 0.0.40
codegen_flags: <defaults>
</compile_context>

<pallas_src>
import jax
import jax.numpy as jnp
from jax import lax
from jax.experimental import pallas as pl
from jax.experimental.pallas import tpu as pltpu


def _round_up(x, m):
    return (x + m - 1) // m * m


# Conservative VMEM budget for the table-resident path: fits inside v7x's
# 64 MiB physical VMEM (and is well under v5e/v6e's 128 MiB).
_VMEM_RESIDENT_BUDGET = 48 * 1024 * 1024


# ---------------------------------------------------------------------------
# Fast path: whole table resident in VMEM, in-kernel gather, dense (T, H) out.
# ---------------------------------------------------------------------------
def _embedding_resident_kernel(ids_ref, w_ref, out_ref):
    # ids_ref : SMEM (n_pad,) int32   scalar-prefetched token ids
    # w_ref   : VMEM (V, H)           whole table (constant block index -> one DMA)
    # out_ref : VMEM (T, H)           dense output tile for this grid step
    i = pl.program_id(0)
    t_block = out_ref.shape[0]
    off = i * t_block

    def body(t, carry):
        tok = ids_ref[off + t]                             # scalar SMEM read
        out_ref[pl.ds(t, 1), :] = w_ref[pl.ds(tok, 1), :]  # VMEM row copy
        return carry

    lax.fori_loop(0, t_block, body, 0)


def _embedding_resident(ids_pad, weight, n_pad, t_block, vmem_limit_bytes):
    hidden = weight.shape[1]
    grid = (n_pad // t_block,)
    return pl.pallas_call(
        _embedding_resident_kernel,
        out_shape=jax.ShapeDtypeStruct((n_pad, hidden), weight.dtype),
        grid_spec=pltpu.PrefetchScalarGridSpec(
            num_scalar_prefetch=1,
            grid=grid,
            in_specs=[
                # Whole table, constant block index -> fetched once, stays resident.
                pl.BlockSpec(weight.shape, lambda i, ids: (0, 0)),
            ],
            out_specs=pl.BlockSpec((t_block, hidden), lambda i, ids: (i, 0)),
        ),
        compiler_params=pltpu.CompilerParams(
            dimension_semantics=("parallel",),
            vmem_limit_bytes=vmem_limit_bytes,
        ),
    )(ids_pad, weight)


# ---------------------------------------------------------------------------
# Fallback: per-token data-dependent BlockSpec gather (large vocab only).
# ---------------------------------------------------------------------------
def _embedding_row_dma_kernel(ids_ref, w_row_ref, out_ref):
    del ids_ref
    out_ref[...] = w_row_ref[...]


def _embedding_row_dma(ids, weight):
    n_tok = ids.shape[0]
    hidden = weight.shape[1]
    return pl.pallas_call(
        _embedding_row_dma_kernel,
        out_shape=jax.ShapeDtypeStruct((n_tok, hidden), weight.dtype),
        grid_spec=pltpu.PrefetchScalarGridSpec(
            num_scalar_prefetch=1,
            grid=(n_tok,),
            in_specs=[
                # Row ids[i] for grid step i; deeper buffering keeps more
                # latency-bound row DMAs in flight.
                pl.BlockSpec((1, hidden), lambda i, ids: (ids[i], 0),
                             pipeline_mode=pl.Buffered(4)),
            ],
            out_specs=pl.BlockSpec((1, hidden), lambda i, ids: (i, 0)),
        ),
        compiler_params=pltpu.CompilerParams(
            dimension_semantics=("parallel",),
        ),
    )(ids, weight)


# ---------------------------------------------------------------------------
# Wrapper: matches PyTorch Embedding.forward -> (B*S, 1, H)
# ---------------------------------------------------------------------------
def embedding_forward(input_ids, weight, *, block_tokens=256):
    """input_ids: (B, S) int, weight: (V, H) -> (B*S, 1, H)."""
    vocab, hidden = weight.shape
    ids = input_ids.reshape(-1).astype(jnp.int32)
    n_tok = ids.shape[0]
    # Bounds safety: PyTorch raises on OOB ids; clamp instead of issuing an
    # out-of-bounds HBM access.
    ids = jnp.clip(ids, 0, vocab - 1)

    itemsize = jnp.dtype(weight.dtype).itemsize
    # Token block: multiple of 8 (sublane-dense stores), capped by block_tokens.
    t_block = min(_round_up(block_tokens, 8), _round_up(max(n_tok, 1), 8))
    n_pad = _round_up(n_tok, t_block)

    table_bytes = vocab * hidden * itemsize
    out_block_bytes = 2 * t_block * hidden * itemsize   # double-buffered out tile
    needed = table_bytes + out_block_bytes + (2 << 20)  # + headroom

    if needed <= _VMEM_RESIDENT_BUDGET:
        ids_pad = ids if n_pad == n_tok else jnp.pad(ids, (0, n_pad - n_tok))
        vmem_limit = max(int(needed), 32 << 20)          # <= 48 MiB -> ok on v7x
        out = _embedding_resident(ids_pad, weight, n_pad, t_block, vmem_limit)
        out = out[:n_tok]
    else:
        # TODO(synk): large-vocab manual DMA gather (weight in pl.ANY, K DMA
        # semaphores in flight) would beat this per-row BlockSpec gather.
        out = _embedding_row_dma(ids, weight)

    # glue reshape: matches torch .view(-1, 1, hidden_size)
    return out.reshape(-1, 1, hidden)


def make_embedding_weight(key, vocab_size, hidden_size, model_type="llama"):
    w = jax.random.normal(key, (vocab_size, hidden_size), dtype=jnp.float32)
    if model_type == "gemma2":
        # Embedding.__init__: weight *= sqrt(hidden_size)
        w = w * jnp.sqrt(jnp.float32(hidden_size))
    return w


if __name__ == "__main__":
    # Small, deterministic shapes: batch=2, seq=8, vocab=32, hidden=128.
    batch, seq = 2, 8
    vocab_size, hidden_size = 32, 128
    model_type = "gemma2"  # exercises the gemma2 normalizer path

    key = jax.random.PRNGKey(0)
    k_w, k_ids = jax.random.split(key)

    weight = make_embedding_weight(k_w, vocab_size, hidden_size, model_type)
    input_ids = jax.random.randint(k_ids, (batch, seq), 0, vocab_size, dtype=jnp.int32)

    out = embedding_forward(input_ids, weight)
    out = jax.block_until_ready(out)

    # Reference check (plain JAX gather).
    ref = weight[input_ids.reshape(-1)].reshape(-1, 1, hidden_size)
    assert out.shape == (batch * seq, 1, hidden_size), out.shape
    assert jnp.allclose(out, ref), "mismatch vs reference gather"

    # Exercise multi-block grid + token padding (n_tok not a multiple of T).
    input_ids2 = jax.random.randint(
        jax.random.PRNGKey(1), (3, 5), 0, vocab_size, dtype=jnp.int32)
    out2 = jax.block_until_ready(
        embedding_forward(input_ids2, weight, block_tokens=8))
    ref2 = weight[input_ids2.reshape(-1)].reshape(-1, 1, hidden_size)
    assert out2.shape == (15, 1, hidden_size), out2.shape
    assert jnp.allclose(out2, ref2), "mismatch vs reference gather (blocked path)"

    print("KERNEL_OK")
</pallas_src>

<mosaic_0001>
module attributes {stable_mosaic.version = 11 : i64} {
  func.func @_embedding_resident_kernel(%arg0: i32, %arg1: memref<16xi32, #tpu.memory_space<smem>>, %arg2: memref<32x128xf32, #tpu.memory_space<vmem>>, %arg3: memref<16x128xf32, #tpu.memory_space<vmem>>) attributes {dimension_semantics = [#tpu.dimension_semantics<parallel>], iteration_bounds = array<i64: 1>, scalar_prefetch = 1 : i64, scratch_operands = 0 : i64, tpu.core_type = #tpu.core_type<tc>, window_params = [{pipeline_mode = #tpu.pipeline_mode<synchronous>, transform_indices = @transform_0, window_bounds = array<i64: 32, 128>}, {transform_indices = @transform_1, window_bounds = array<i64: 16, 128>}]} {
    %c16_i32 = arith.constant 16 : i32
    %0 = arith.muli %arg0, %c16_i32 : i32
    %c0_i32 = arith.constant 0 : i32
    %c16_i32_0 = arith.constant 16 : i32
    %1 = arith.addi %c0_i32, %c16_i32_0 : i32
    %c1_i32 = arith.constant 1 : i32
    scf.for %arg4 = %c0_i32 to %1 step %c1_i32  : i32 {
      %2 = arith.addi %0, %arg4 : i32
      %3 = arith.index_cast %2 : i32 to index
      %4 = memref.load %arg1[%3] : memref<16xi32, #tpu.memory_space<smem>>
      %5 = arith.index_cast %4 : i32 to index
      %c0 = arith.constant 0 : index
      %6 = vector.load %arg2[%5, %c0] : memref<32x128xf32, #tpu.memory_space<vmem>>, vector<1x128xf32>
      %7 = arith.index_cast %arg4 : i32 to index
      %c0_2 = arith.constant 0 : index
      %8 = vector.load %arg3[%7, %c0_2] : memref<16x128xf32, #tpu.memory_space<vmem>>, vector<1x128xf32>
      tpu.vector_store %arg3[%7, %c0_2], %6 {strides = array<i32>} : memref<16x128xf32, #tpu.memory_space<vmem>>, vector<1x128xf32>,
    }
    %c16_i32_1 = arith.constant 16 : i32
    return
  }
  func.func @transform_0(%arg0: i32, %arg1: memref<16xi32, #tpu.memory_space<smem>>) -> (i32, i32) {
    %c0_i32 = arith.constant 0 : i32
    %c0_i32_0 = arith.constant 0 : i32
    %c0_i32_1 = arith.constant 0 : i32
    return %c0_i32, %c0_i32_0 : i32, i32
  }
  func.func @transform_1(%arg0: i32, %arg1: memref<16xi32, #tpu.memory_space<smem>>) -> (i32, i32) {
    %c0_i32 = arith.constant 0 : i32
    %c0_i32_0 = arith.constant 0 : i32
    return %arg0, %c0_i32 : i32, i32
  }
}

</mosaic_0001>

<bundles_post_ra>
// kernel: tpu_custom_call.1
= control target key start
LH: loop header
LB: loop body
LE: loop exit
PB: predicated region body
PF: predicated region fallthrough
CT: control target
= control target key end

     0   :  { %s140_s9 = smov [#allocation3]   ;;  %s175_s0 = inlined_call_operand.hbm [shape: s32[16], index: 0, kind: input, shape index: {}]   ;;  %s176_s1 = inlined_call_operand.hbm [shape: f32[32,128], index: 1, kind: input, shape index: {}]   ;;  %s177_s2 = inlined_call_operand.hbm [shape: f32[16,128], index: 2, kind: output, shape index: {}]  }
   0x1   :  { %8 = dma.hbm_to_smem %s175_s0, 16, %s140_s9, [#allocation2] }
   0x2   :  { %130 = dma.done.wait [#allocation2], 16 }
   0x3   :  { %131 = vsyncadd [#allocation2], 4294967280 }
   0x4   :  { %10 = sfence }
   0x5   :  { %11 = vsyncpa [#allocation5], 0 }
   0x6   :  { %12 = vsyncpa [#allocation6], 0  ;;  %s141_s12 = smov [#allocation4]  }
   0x7   :  { %s18_s13 = sshll.u32 %s141_s12, 4  ;;  %s19_s13 = int_to_ptr.vmem [resolvable:$true] %s18_s13 }
   0x8   :  { %s94_s14 = scalar_lea.vmem %s19_s13, 512  ;;  %p99_p1 = scmp.lt.s32.totalorder %s19_s13, %s19_s13 }
   0x9   :  { %p95_p0 = scmp.ne.s32.totalorder %s19_s13, %s94_s14  ;;  %p100_p2 = scmp.lt.s32.totalorder %s94_s14, %s94_s14 }
   0xb   :  { %p101_p3 = por %p100_p2, %p99_p1 }
   0xd   :  { %p102_p4 = pnand %p101_p3, %p95_p0 }
   0xf   :  { %105 = shalt.err (!%p102_p4)
}
  0x10   :  { %s142_s15 = smov 128   ;;  %s143_s16 = smov 8  }
  0x11   :  { %24 = dma.hbm_to_vmem [thread:$0]  %s176_s1, 512, %s19_s13, [#allocation5], %s142_s15, %s142_s15, %s143_s16  }
  0x12   :  { %132 = dma.done.wait [#allocation5], 512  }
  0x13   :  { %133 = vsyncadd [#allocation5], 4294966784  ;;  %s136_s18 = smov 0  }
  0x14 LB: > { %s36_s19 = sld [smem:[#allocation3 + %s138_s18]]  ;;  %s39_s21 = scalar_lea.vmem [#allocation7], %s138_s18  ;;  %s138_s18 = sphi %s136_s18, %s34_s18  }
  0x15   : > { %s34_s18 = sadd.s32 1, %s138_s18  }
  0x16   : > { %p31_p5 = scmp.ge.s32.totalorder %s34_s18, 16  }
  0x17   :  { %s144_s22 = smov (%p31_p5), [#allocation7]  }
  0x18   :  { %33 = sbr.rel (!%p31_p5) target bundleno = 20 (0x14), region = 37  ;;  %s46_s23 = sshll.u32 (%p31_p5), %s144_s22, 4  ;;  %s47_s23 = int_to_ptr.vmem [resolvable:$true] %s46_s23 }
  0x19   :  { %s106_s24 = scalar_lea.vmem (%p31_p5), %s47_s23, 256  ;;  %p111_p7 = scmp.lt.s32.totalorder (%p31_p5), %s47_s23, %s47_s23 }
  0x1a   : > { %s37_s20 = scalar_lea.vmem [#allocation4], %s36_s19  ;;  %p107_p6 = scmp.ne.s32.totalorder (%p31_p5), %s47_s23, %s106_s24 }
  0x1b   : > { %v38_v0 = vld [vmem:[%s37_s20] sm:$0x1]  ;;  %p112_p8 = scmp.lt.s32.totalorder (%p31_p5), %s106_s24, %s106_s24 }
  0x1c   : > { %40 = vst [vmem:[%s39_s21] sm:$0x1] %v38_v0 }
  0x1d   :  { %p113_p9 = por %p112_p8, %p111_p7 }
  0x1f   :  { %p114_p10 = pnand %p113_p9, %p107_p6 }
  0x21   :  { %117 = shalt.err (!%p114_p10)
}
  0x22   :  { %52 = dma.vmem_to_hbm [thread:$0]  %s47_s23, 256, %s177_s2, [#allocation6], %s142_s15, %s142_s15, %s143_s16  }
  0x23   :  { %134 = dma.done.wait [#allocation6], 256  }
  0x24   :  { %135 = vsyncadd [#allocation6], 4294967040 }
  0x25   :  { %56 = vsyncpa [#allocation5], 1 }
  0x26   :  { %57 = vsyncpa [#allocation6], 1 }

</bundles_post_ra>
